<compile_context>
chip_gen: v7x
topology: tpu7x:2x2x1
jax: 0.10.0
libtpu: 0.0.40
codegen_flags: <defaults>
</compile_context>

<pallas_src>
import functools

import jax
import jax.numpy as jnp
from jax.experimental import pallas as pl
from jax.experimental.pallas import tpu as pltpu

_EPS = 1e-5


def _round_up(n, m):
    return ((n + m - 1) // m) * m


def _vmem_capacity_bytes():
    try:
        return int(pltpu.get_tpu_info().vmem_capacity_bytes)
    except Exception:
        return 64 << 20  # conservative fallback (v7x per-core VMEM)


# ----------------------------- kernel helpers ------------------------------

def _batch_stats(y):
    """Per-feature (mean, mean_of_squares) over rows via MXU ones-row matmuls
    (f32 operands / f32 accumulate) so reductions stay off the XLU/VPU."""
    n = y.shape[0]
    ones = jnp.ones((1, n), jnp.float32)
    inv_n = 1.0 / n
    mean = jnp.dot(ones, y, preferred_element_type=jnp.float32) * inv_n
    mean_sq = jnp.dot(ones, y * y, preferred_element_type=jnp.float32) * inv_n
    return mean, mean_sq


def _bn_relu(y, mean, mean_sq, gb):
    """Fused BatchNorm (training-mode batch stats) + affine + ReLU; returns
    bf16 activations ready for the next MXU dot.  gb is [gamma; beta]."""
    var = mean_sq - mean * mean
    scale = gb[0:1, :] * jax.lax.rsqrt(var + _EPS)
    shift = gb[1:2, :] - mean * scale
    return jnp.maximum(y * scale + shift, 0.0).astype(jnp.bfloat16)


def _sigmoid(z):
    # Single-EUP-op sigmoid (tanh form); exactly bounded in [0, 1].
    return 0.5 * jnp.tanh(0.5 * z) + 0.5


# ------------------------------ fused kernel -------------------------------

def _generator_fused_kernel(x_ref, w1, gb1, w2, gb2, w3, gb3, w4, gb4,
                            w5, b5, out_ref):
    def block(x_bf16, w_ref, gb_ref):
        # Linear (bias-free: the bias cancels under training-mode BN).
        y = jnp.dot(x_bf16, w_ref[...], preferred_element_type=jnp.float32)
        mean, mean_sq = _batch_stats(y)
        return _bn_relu(y, mean, mean_sq, gb_ref[...])

    x = x_ref[...].astype(jnp.bfloat16)
    x = block(x, w1, gb1)
    x = block(x, w2, gb2)
    x = block(x, w3, gb3)
    x = block(x, w4, gb4)
    z = jnp.dot(x, w5[...], preferred_element_type=jnp.float32) + b5[...]
    out_ref[...] = _sigmoid(z).astype(out_ref.dtype)


# --------------------------- batch-tiled kernels ----------------------------

def _lin_stats_kernel(x_ref, w_ref, y_ref, part_ref):
    y = jnp.dot(x_ref[...].astype(jnp.bfloat16), w_ref[...],
                preferred_element_type=jnp.float32)
    y_ref[...] = y
    ones = jnp.ones((1, y.shape[0]), jnp.float32)
    s = jnp.dot(ones, y, preferred_element_type=jnp.float32)
    ssq = jnp.dot(ones, y * y, preferred_element_type=jnp.float32)
    part_ref[...] = jnp.concatenate([s, ssq], axis=0).reshape(part_ref.shape)


def _bn_lin_stats_kernel(y_ref, stats_ref, gb_ref, w_ref, ynext_ref, part_ref):
    a = _bn_relu(y_ref[...], stats_ref[0:1, :], stats_ref[1:2, :], gb_ref[...])
    ynext = jnp.dot(a, w_ref[...], preferred_element_type=jnp.float32)
    ynext_ref[...] = ynext
    ones = jnp.ones((1, a.shape[0]), jnp.float32)
    s = jnp.dot(ones, ynext, preferred_element_type=jnp.float32)
    ssq = jnp.dot(ones, ynext * ynext, preferred_element_type=jnp.float32)
    part_ref[...] = jnp.concatenate([s, ssq], axis=0).reshape(part_ref.shape)


def _bn_lin_sigmoid_kernel(y_ref, stats_ref, gb_ref, w_ref, b_ref, out_ref):
    a = _bn_relu(y_ref[...], stats_ref[0:1, :], stats_ref[1:2, :], gb_ref[...])
    z = jnp.dot(a, w_ref[...], preferred_element_type=jnp.float32) + b_ref[...]
    out_ref[...] = _sigmoid(z).astype(out_ref.dtype)


# -------------------------------- wrappers ----------------------------------

def prepare_generator_params(params):
    """One-time parameter prep (hoisted out of the per-step forward):
      * Linear weights cast to bf16 (MXU inputs).
      * BN-block linear biases b1..b4 dropped (cancel under training-mode BN).
      * gamma/beta packed into one (2, N) f32 array per BN layer.
      * Final layer padded to a lane-dense multiple of 128 output columns."""
    ws, gbs = [], []
    for layer in range(4):
        w, _b, g, be = params[4 * layer:4 * layer + 4]
        ws.append(w.astype(jnp.bfloat16))
        gbs.append(jnp.concatenate([g, be], axis=0))       # (2, N)
    w5, b5 = params[16], params[17]
    im_dim = w5.shape[1]
    pad = _round_up(im_dim, 128) - im_dim
    if pad:
        w5 = jnp.pad(w5, ((0, 0), (0, pad)))
        b5 = jnp.pad(b5, ((0, 0), (0, pad)))
    return {"ws": tuple(ws), "gbs": tuple(gbs),
            "w5": w5.astype(jnp.bfloat16), "b5": b5}


@jax.jit
def generator_forward_fused(noise, prepped):
    """Single pallas_call; whole batch + all activations resident in VMEM.
    Returns the lane-dense padded (B, round_up(im_dim, 128)) bf16 output."""
    ws, gbs = prepped["ws"], prepped["gbs"]
    w5, b5 = prepped["w5"], prepped["b5"]
    batch, in_dim = noise.shape
    im_dim_p = w5.shape[1]
    widths = [in_dim] + [w.shape[1] for w in ws] + [im_dim_p]

    args = [noise]
    for w, gb in zip(ws, gbs):
        args += [w, gb]
    args += [w5, b5]

    flops = sum(2 * batch * widths[i] * widths[i + 1] for i in range(5))
    flops += sum(4 * batch * w.shape[1] for w in ws)        # stats matmuls
    transcendentals = sum(w.shape[1] for w in ws) + batch * im_dim_p
    bytes_accessed = (sum(int(a.size) * a.dtype.itemsize for a in args)
                      + batch * im_dim_p * 2)

    param_bytes = sum(int(a.size) * a.dtype.itemsize for a in args[1:])
    act_bytes = batch * sum(widths) * 6      # f32 y + bf16 copy per feature
    vmem_cap = _vmem_capacity_bytes()
    vmem_limit = int(min(max(2 * (param_bytes + act_bytes) + (4 << 20),
                             32 << 20),
                         vmem_cap - (8 << 20)))

    vspec = pl.BlockSpec(memory_space=pltpu.MemorySpace.VMEM)
    return pl.pallas_call(
        _generator_fused_kernel,
        out_shape=jax.ShapeDtypeStruct((batch, im_dim_p), jnp.bfloat16),
        in_specs=[vspec] * len(args),
        out_specs=vspec,
        compiler_params=pltpu.CompilerParams(vmem_limit_bytes=vmem_limit),
        cost_estimate=pl.CostEstimate(flops=flops,
                                      transcendentals=transcendentals,
                                      bytes_accessed=bytes_accessed),
    )(*args)


@functools.partial(jax.jit, static_argnames=("tile_rows",))
def generator_forward_tiled(noise, prepped, *, tile_rows):
    """Batch-tiled two-pass-BN path for batches too large for VMEM residency.
    grid=(batch // tile_rows,) with dimension_semantics=("parallel",) so tiles
    split across TensorCores (v7x megacore) and pipeline DMA with compute."""
    # TODO(synk): on v7x the per-tile stats could be combined in CMEM /
    # VMEM_SHARED inside the kernel instead of the tiny XLA reduce between calls.
    ws, gbs = prepped["ws"], prepped["gbs"]
    w5, b5 = prepped["w5"], prepped["b5"]
    batch, in_dim = noise.shape
    im_dim_p = w5.shape[1]
    assert batch % tile_rows == 0, "batch must be divisible by tile_rows"
    nt = batch // tile_rows

    vmem_cap = _vmem_capacity_bytes()
    cparams = pltpu.CompilerParams(
        dimension_semantics=("parallel",),
        vmem_limit_bytes=int(min(vmem_cap - (8 << 20), 64 << 20)))

    def rows(d):
        return pl.BlockSpec((tile_rows, d), lambda i: (i, 0))

    def full2(a):
        return pl.BlockSpec(a.shape, lambda i: (0, 0))

    # Layer 1: Linear + per-tile partial stats.
    d1 = ws[0].shape[1]
    y, part = pl.pallas_call(
        _lin_stats_kernel,
        grid=(nt,),
        out_shape=(jax.ShapeDtypeStruct((batch, d1), jnp.float32),
                   jax.ShapeDtypeStruct((nt, 2, d1), jnp.float32)),
        in_specs=[rows(in_dim), full2(ws[0])],
        out_specs=(rows(d1), pl.BlockSpec((1, 2, d1), lambda i: (i, 0, 0))),
        compiler_params=cparams,
    )(noise, ws[0])
    stats = jnp.sum(part, axis=0) / batch            # (2, d): [mean; mean_sq]

    # Layers 2..4: BN + ReLU + Linear + per-tile partial stats.
    for layer in range(1, 4):
        d_in, d_out = ws[layer].shape
        y, part = pl.pallas_call(
            _bn_lin_stats_kernel,
            grid=(nt,),
            out_shape=(jax.ShapeDtypeStruct((batch, d_out), jnp.float32),
                       jax.ShapeDtypeStruct((nt, 2, d_out), jnp.float32)),
            in_specs=[rows(d_in), full2(stats), full2(gbs[layer - 1]),
                      full2(ws[layer])],
            out_specs=(rows(d_out),
                       pl.BlockSpec((1, 2, d_out), lambda i: (i, 0, 0))),
            compiler_params=cparams,
        )(y, stats, gbs[layer - 1], ws[layer])
        stats = jnp.sum(part, axis=0) / batch

    # Final: BN + ReLU + Linear(+bias) + Sigmoid.
    d4 = ws[3].shape[1]
    return pl.pallas_call(
        _bn_lin_sigmoid_kernel,
        grid=(nt,),
        out_shape=jax.ShapeDtypeStruct((batch, im_dim_p), jnp.bfloat16),
        in_specs=[rows(d4), full2(stats), full2(gbs[3]), full2(w5), full2(b5)],
        out_specs=rows(im_dim_p),
        compiler_params=cparams,
    )(y, stats, gbs[3], w5, b5)


def _pick_tile_rows(batch):
    for t in (1024, 512, 256, 128, 64, 32, 16, 8):
        if batch % t == 0:
            return t
    return batch


def generator_forward(noise, prepped, tile_rows=None):
    """Forward pass.  Picks the fused whole-batch-resident kernel when the
    activation footprint fits in VMEM (per-generation query), otherwise the
    batch-tiled two-pass-BN path.  Returns the padded bf16 output slab."""
    batch, in_dim = noise.shape
    ws = prepped["ws"]
    widths = [in_dim] + [w.shape[1] for w in ws] + [prepped["w5"].shape[1]]
    if tile_rows is None:
        param_bytes = sum(int(a.size) * a.dtype.itemsize
                          for a in jax.tree_util.tree_leaves(prepped))
        act_bytes = batch * sum(widths) * 6
        fits = (2 * (param_bytes + act_bytes) + (4 << 20)
                <= _vmem_capacity_bytes() - (8 << 20))
        if fits:
            return generator_forward_fused(noise, prepped)
        tile_rows = _pick_tile_rows(batch)
    return generator_forward_tiled(noise, prepped, tile_rows=tile_rows)


# ------------------------------ reference/init ------------------------------

def generator_reference(noise, params):
    """Pure-JAX f32 reference (exact PyTorch training-mode semantics)."""
    x = noise
    for layer in range(4):
        w, b, g, be = params[4 * layer:4 * layer + 4]
        y = x @ w + b
        mean = jnp.mean(y, axis=0, keepdims=True)
        var = jnp.mean((y - mean) ** 2, axis=0, keepdims=True)
        y = (y - mean) / jnp.sqrt(var + 1e-5) * g + be
        x = jnp.maximum(y, 0.0)
    w, b = params[16], params[17]
    return jax.nn.sigmoid(x @ w + b)


def init_generator_params(key, input_dim, hidden_dim, im_dim):
    """PyTorch-like init: U(-1/sqrt(fan_in), 1/sqrt(fan_in)) for Linear
    weights/biases; gamma=1, beta=0 for BatchNorm."""
    dims = [input_dim, hidden_dim, hidden_dim * 2, hidden_dim * 4,
            hidden_dim * 8, im_dim]
    params = []
    keys = jax.random.split(key, 10)
    ki = 0
    for layer in range(5):
        fan_in, fan_out = dims[layer], dims[layer + 1]
        bound = 1.0 / (fan_in ** 0.5)
        w = jax.random.uniform(keys[ki], (fan_in, fan_out), jnp.float32,
                               -bound, bound)
        ki += 1
        b = jax.random.uniform(keys[ki], (1, fan_out), jnp.float32,
                               -bound, bound)
        ki += 1
        params.append(w)
        params.append(b)
        if layer < 4:  # BN affine params for the 4 gen blocks
            params.append(jnp.ones((1, fan_out), jnp.float32))   # gamma
            params.append(jnp.zeros((1, fan_out), jnp.float32))  # beta
    return params


if __name__ == "__main__":
    # Small shapes consistent with the module: input_dim=10, hidden_dim=32,
    # im_dim = 3*8*8 = 192.  Batch is a multiple of 16 (bf16 sublane packing).
    input_dim, hidden_dim, im_dim = 10, 32, 3 * 8 * 8

    key = jax.random.PRNGKey(0)
    k_noise, k_noise2, k_params = jax.random.split(key, 3)
    params = init_generator_params(k_params, input_dim, hidden_dim, im_dim)
    prepped = prepare_generator_params(params)   # one-time bf16/packing prep
    im_dim_p = prepped["w5"].shape[1]

    def check(out_padded, noise_in, atol):
        ref = generator_reference(noise_in, params)
        out = out_padded[:, :im_dim].astype(jnp.float32)  # consumer-side slice
        assert out_padded.shape == (noise_in.shape[0], im_dim_p)
        assert bool(jnp.all(jnp.isfinite(out)))
        assert bool(jnp.all((out >= 0.0) & (out <= 1.0 + 1e-3)))
        err = float(jnp.max(jnp.abs(out - ref)))
        assert err < atol, err

    # Fused whole-batch-resident path.
    noise = jax.random.normal(k_noise, (16, input_dim), jnp.float32)
    out = jax.block_until_ready(generator_forward(noise, prepped))
    check(out, noise, 5e-2)

    # Batch-tiled two-pass-BN path (forced here; auto-picked for large batches).
    noise_t = jax.random.normal(k_noise2, (64, input_dim), jnp.float32)
    out_t = jax.block_until_ready(
        generator_forward(noise_t, prepped, tile_rows=16))
    check(out_t, noise_t, 5e-2)

    print("KERNEL_OK")
</pallas_src>

<mosaic_0001>
module attributes {stable_mosaic.version = 11 : i64} {
  func.func @_generator_fused_kernel(%arg0: memref<16x10xf32, #tpu.memory_space<vmem>>, %arg1: memref<10x32xbf16, #tpu.memory_space<vmem>>, %arg2: memref<2x32xf32, #tpu.memory_space<vmem>>, %arg3: memref<32x64xbf16, #tpu.memory_space<vmem>>, %arg4: memref<2x64xf32, #tpu.memory_space<vmem>>, %arg5: memref<64x128xbf16, #tpu.memory_space<vmem>>, %arg6: memref<2x128xf32, #tpu.memory_space<vmem>>, %arg7: memref<128x256xbf16, #tpu.memory_space<vmem>>, %arg8: memref<2x256xf32, #tpu.memory_space<vmem>>, %arg9: memref<256x256xbf16, #tpu.memory_space<vmem>>, %arg10: memref<1x256xf32, #tpu.memory_space<vmem>>, %arg11: memref<16x256xbf16, #tpu.memory_space<vmem>>) attributes {dimension_semantics = [], scalar_prefetch = 0 : i64, scratch_operands = 0 : i64, tpu.core_type = #tpu.core_type<tc>} {
    %c0 = arith.constant 0 : index
    %c0_0 = arith.constant 0 : index
    %0 = vector.load %arg0[%c0, %c0_0] : memref<16x10xf32, #tpu.memory_space<vmem>>, vector<16x10xf32>
    %1 = arith.truncf %0 : vector<16x10xf32> to vector<16x10xbf16>
    %c0_1 = arith.constant 0 : index
    %c0_2 = arith.constant 0 : index
    %2 = vector.load %arg1[%c0_1, %c0_2] : memref<10x32xbf16, #tpu.memory_space<vmem>>, vector<10x32xbf16>
    %cst = arith.constant dense<0.000000e+00> : vector<16x32xf32>
    %3 = tpu.matmul %1, %2, %cst {dimension_numbers = #tpu.dot_dimension_numbers<[1], [0], [0], [1], [0, 0, 1, 1], [], []>} : vector<16x10xbf16>, vector<10x32xbf16>, vector<16x32xf32> -> vector<16x32xf32>
    %cst_3 = arith.constant 1.000000e+00 : f32
    %4 = vector.broadcast %cst_3 : f32 to vector<1x16xf32>
    %cst_4 = arith.constant dense<0.000000e+00> : vector<1x32xf32>
    %5 = tpu.matmul %4, %3, %cst_4 {dimension_numbers = #tpu.dot_dimension_numbers<[1], [0], [0], [1], [0, 0, 1, 1], [], []>} : vector<1x16xf32>, vector<16x32xf32>, vector<1x32xf32> -> vector<1x32xf32>
    %cst_5 = arith.constant 6.250000e-02 : f32
    %6 = vector.broadcast %cst_5 : f32 to vector<1x32xf32>
    %7 = arith.mulf %5, %6 : vector<1x32xf32>
    %8 = arith.mulf %3, %3 : vector<16x32xf32>
    %cst_6 = arith.constant dense<0.000000e+00> : vector<1x32xf32>
    %9 = tpu.matmul %4, %8, %cst_6 {dimension_numbers = #tpu.dot_dimension_numbers<[1], [0], [0], [1], [0, 0, 1, 1], [], []>} : vector<1x16xf32>, vector<16x32xf32>, vector<1x32xf32> -> vector<1x32xf32>
    %cst_7 = arith.constant 6.250000e-02 : f32
    %10 = vector.broadcast %cst_7 : f32 to vector<1x32xf32>
    %11 = arith.mulf %9, %10 : vector<1x32xf32>
    %c0_8 = arith.constant 0 : index
    %c0_9 = arith.constant 0 : index
    %12 = vector.load %arg2[%c0_8, %c0_9] : memref<2x32xf32, #tpu.memory_space<vmem>>, vector<2x32xf32>
    %13 = arith.mulf %7, %7 : vector<1x32xf32>
    %14 = arith.subf %11, %13 : vector<1x32xf32>
    %15 = vector.extract_strided_slice %12 {offsets = [0, 0], sizes = [1, 32], strides = [1, 1]} : vector<2x32xf32> to vector<1x32xf32>
    %cst_10 = arith.constant 9.99999974E-6 : f32
    %16 = vector.broadcast %cst_10 : f32 to vector<1x32xf32>
    %17 = arith.addf %14, %16 : vector<1x32xf32>
    %18 = math.rsqrt %17 : vector<1x32xf32>
    %19 = arith.mulf %15, %18 : vector<1x32xf32>
    %20 = vector.extract_strided_slice %12 {offsets = [1, 0], sizes = [1, 32], strides = [1, 1]} : vector<2x32xf32> to vector<1x32xf32>
    %21 = arith.mulf %7, %19 : vector<1x32xf32>
    %22 = arith.subf %20, %21 : vector<1x32xf32>
    %23 = vector.broadcast %19 : vector<1x32xf32> to vector<16x32xf32>
    %24 = arith.mulf %3, %23 : vector<16x32xf32>
    %25 = vector.broadcast %22 : vector<1x32xf32> to vector<16x32xf32>
    %26 = arith.addf %24, %25 : vector<16x32xf32>
    %cst_11 = arith.constant 0.000000e+00 : f32
    %27 = vector.broadcast %cst_11 : f32 to vector<16x32xf32>
    %28 = arith.maximumf %26, %27 : vector<16x32xf32>
    %29 = arith.truncf %28 : vector<16x32xf32> to vector<16x32xbf16>
    %c0_12 = arith.constant 0 : index
    %c0_13 = arith.constant 0 : index
    %30 = vector.load %arg3[%c0_12, %c0_13] : memref<32x64xbf16, #tpu.memory_space<vmem>>, vector<32x64xbf16>
    %cst_14 = arith.constant dense<0.000000e+00> : vector<16x64xf32>
    %31 = tpu.matmul %29, %30, %cst_14 {dimension_numbers = #tpu.dot_dimension_numbers<[1], [0], [0], [1], [0, 0, 1, 1], [], []>} : vector<16x32xbf16>, vector<32x64xbf16>, vector<16x64xf32> -> vector<16x64xf32>
    %cst_15 = arith.constant 1.000000e+00 : f32
    %32 = vector.broadcast %cst_15 : f32 to vector<1x16xf32>
    %cst_16 = arith.constant dense<0.000000e+00> : vector<1x64xf32>
    %33 = tpu.matmul %32, %31, %cst_16 {dimension_numbers = #tpu.dot_dimension_numbers<[1], [0], [0], [1], [0, 0, 1, 1], [], []>} : vector<1x16xf32>, vector<16x64xf32>, vector<1x64xf32> -> vector<1x64xf32>
    %cst_17 = arith.constant 6.250000e-02 : f32
    %34 = vector.broadcast %cst_17 : f32 to vector<1x64xf32>
    %35 = arith.mulf %33, %34 : vector<1x64xf32>
    %36 = arith.mulf %31, %31 : vector<16x64xf32>
    %cst_18 = arith.constant dense<0.000000e+00> : vector<1x64xf32>
    %37 = tpu.matmul %32, %36, %cst_18 {dimension_numbers = #tpu.dot_dimension_numbers<[1], [0], [0], [1], [0, 0, 1, 1], [], []>} : vector<1x16xf32>, vector<16x64xf32>, vector<1x64xf32> -> vector<1x64xf32>
    %cst_19 = arith.constant 6.250000e-02 : f32
    %38 = vector.broadcast %cst_19 : f32 to vector<1x64xf32>
    %39 = arith.mulf %37, %38 : vector<1x64xf32>
    %c0_20 = arith.constant 0 : index
    %c0_21 = arith.constant 0 : index
    %40 = vector.load %arg4[%c0_20, %c0_21] : memref<2x64xf32, #tpu.memory_space<vmem>>, vector<2x64xf32>
    %41 = arith.mulf %35, %35 : vector<1x64xf32>
    %42 = arith.subf %39, %41 : vector<1x64xf32>
    %43 = vector.extract_strided_slice %40 {offsets = [0, 0], sizes = [1, 64], strides = [1, 1]} : vector<2x64xf32> to vector<1x64xf32>
    %cst_22 = arith.constant 9.99999974E-6 : f32
    %44 = vector.broadcast %cst_22 : f32 to vector<1x64xf32>
    %45 = arith.addf %42, %44 : vector<1x64xf32>
    %46 = math.rsqrt %45 : vector<1x64xf32>
    %47 = arith.mulf %43, %46 : vector<1x64xf32>
    %48 = vector.extract_strided_slice %40 {offsets = [1, 0], sizes = [1, 64], strides = [1, 1]} : vector<2x64xf32> to vector<1x64xf32>
    %49 = arith.mulf %35, %47 : vector<1x64xf32>
    %50 = arith.subf %48, %49 : vector<1x64xf32>
    %51 = vector.broadcast %47 : vector<1x64xf32> to vector<16x64xf32>
    %52 = arith.mulf %31, %51 : vector<16x64xf32>
    %53 = vector.broadcast %50 : vector<1x64xf32> to vector<16x64xf32>
    %54 = arith.addf %52, %53 : vector<16x64xf32>
    %cst_23 = arith.constant 0.000000e+00 : f32
    %55 = vector.broadcast %cst_23 : f32 to vector<16x64xf32>
    %56 = arith.maximumf %54, %55 : vector<16x64xf32>
    %57 = arith.truncf %56 : vector<16x64xf32> to vector<16x64xbf16>
    %c0_24 = arith.constant 0 : index
    %c0_25 = arith.constant 0 : index
    %58 = vector.load %arg5[%c0_24, %c0_25] : memref<64x128xbf16, #tpu.memory_space<vmem>>, vector<64x128xbf16>
    %cst_26 = arith.constant dense<0.000000e+00> : vector<16x128xf32>
    %59 = tpu.matmul %57, %58, %cst_26 {dimension_numbers = #tpu.dot_dimension_numbers<[1], [0], [0], [1], [0, 0, 1, 1], [], []>} : vector<16x64xbf16>, vector<64x128xbf16>, vector<16x128xf32> -> vector<16x128xf32>
    %cst_27 = arith.constant 1.000000e+00 : f32
    %60 = vector.broadcast %cst_27 : f32 to vector<1x16xf32>
    %cst_28 = arith.constant dense<0.000000e+00> : vector<1x128xf32>
    %61 = tpu.matmul %60, %59, %cst_28 {dimension_numbers = #tpu.dot_dimension_numbers<[1], [0], [0], [1], [0, 0, 1, 1], [], []>} : vector<1x16xf32>, vector<16x128xf32>, vector<1x128xf32> -> vector<1x128xf32>
    %cst_29 = arith.constant 6.250000e-02 : f32
    %62 = vector.broadcast %cst_29 : f32 to vector<1x128xf32>
    %63 = arith.mulf %61, %62 : vector<1x128xf32>
    %64 = arith.mulf %59, %59 : vector<16x128xf32>
    %cst_30 = arith.constant dense<0.000000e+00> : vector<1x128xf32>
    %65 = tpu.matmul %60, %64, %cst_30 {dimension_numbers = #tpu.dot_dimension_numbers<[1], [0], [0], [1], [0, 0, 1, 1], [], []>} : vector<1x16xf32>, vector<16x128xf32>, vector<1x128xf32> -> vector<1x128xf32>
    %cst_31 = arith.constant 6.250000e-02 : f32
    %66 = vector.broadcast %cst_31 : f32 to vector<1x128xf32>
    %67 = arith.mulf %65, %66 : vector<1x128xf32>
    %c0_32 = arith.constant 0 : index
    %c0_33 = arith.constant 0 : index
    %68 = vector.load %arg6[%c0_32, %c0_33] : memref<2x128xf32, #tpu.memory_space<vmem>>, vector<2x128xf32>
    %69 = arith.mulf %63, %63 : vector<1x128xf32>
    %70 = arith.subf %67, %69 : vector<1x128xf32>
    %71 = vector.extract_strided_slice %68 {offsets = [0, 0], sizes = [1, 128], strides = [1, 1]} : vector<2x128xf32> to vector<1x128xf32>
    %cst_34 = arith.constant 9.99999974E-6 : f32
    %72 = vector.broadcast %cst_34 : f32 to vector<1x128xf32>
    %73 = arith.addf %70, %72 : vector<1x128xf32>
    %74 = math.rsqrt %73 : vector<1x128xf32>
    %75 = arith.mulf %71, %74 : vector<1x128xf32>
    %76 = vector.extract_strided_slice %68 {offsets = [1, 0], sizes = [1, 128], strides = [1, 1]} : vector<2x128xf32> to vector<1x128xf32>
    %77 = arith.mulf %63, %75 : vector<1x128xf32>
    %78 = arith.subf %76, %77 : vector<1x128xf32>
    %79 = vector.broadcast %75 : vector<1x128xf32> to vector<16x128xf32>
    %80 = arith.mulf %59, %79 : vector<16x128xf32>
    %81 = vector.broadcast %78 : vector<1x128xf32> to vector<16x128xf32>
    %82 = arith.addf %80, %81 : vector<16x128xf32>
    %cst_35 = arith.constant 0.000000e+00 : f32
    %83 = vector.broadcast %cst_35 : f32 to vector<16x128xf32>
    %84 = arith.maximumf %82, %83 : vector<16x128xf32>
    %85 = arith.truncf %84 : vector<16x128xf32> to vector<16x128xbf16>
    %c0_36 = arith.constant 0 : index
    %c0_37 = arith.constant 0 : index
    %86 = vector.load %arg7[%c0_36, %c0_37] : memref<128x256xbf16, #tpu.memory_space<vmem>>, vector<128x256xbf16>
    %cst_38 = arith.constant dense<0.000000e+00> : vector<16x256xf32>
    %87 = tpu.matmul %85, %86, %cst_38 {dimension_numbers = #tpu.dot_dimension_numbers<[1], [0], [0], [1], [0, 0, 1, 1], [], []>} : vector<16x128xbf16>, vector<128x256xbf16>, vector<16x256xf32> -> vector<16x256xf32>
    %cst_39 = arith.constant 1.000000e+00 : f32
    %88 = vector.broadcast %cst_39 : f32 to vector<1x16xf32>
    %cst_40 = arith.constant dense<0.000000e+00> : vector<1x256xf32>
    %89 = tpu.matmul %88, %87, %cst_40 {dimension_numbers = #tpu.dot_dimension_numbers<[1], [0], [0], [1], [0, 0, 1, 1], [], []>} : vector<1x16xf32>, vector<16x256xf32>, vector<1x256xf32> -> vector<1x256xf32>
    %cst_41 = arith.constant 6.250000e-02 : f32
    %90 = vector.broadcast %cst_41 : f32 to vector<1x256xf32>
    %91 = arith.mulf %89, %90 : vector<1x256xf32>
    %92 = arith.mulf %87, %87 : vector<16x256xf32>
    %cst_42 = arith.constant dense<0.000000e+00> : vector<1x256xf32>
    %93 = tpu.matmul %88, %92, %cst_42 {dimension_numbers = #tpu.dot_dimension_numbers<[1], [0], [0], [1], [0, 0, 1, 1], [], []>} : vector<1x16xf32>, vector<16x256xf32>, vector<1x256xf32> -> vector<1x256xf32>
    %cst_43 = arith.constant 6.250000e-02 : f32
    %94 = vector.broadcast %cst_43 : f32 to vector<1x256xf32>
    %95 = arith.mulf %93, %94 : vector<1x256xf32>
    %c0_44 = arith.constant 0 : index
    %c0_45 = arith.constant 0 : index
    %96 = vector.load %arg8[%c0_44, %c0_45] : memref<2x256xf32, #tpu.memory_space<vmem>>, vector<2x256xf32>
    %97 = arith.mulf %91, %91 : vector<1x256xf32>
    %98 = arith.subf %95, %97 : vector<1x256xf32>
    %99 = vector.extract_strided_slice %96 {offsets = [0, 0], sizes = [1, 256], strides = [1, 1]} : vector<2x256xf32> to vector<1x256xf32>
    %cst_46 = arith.constant 9.99999974E-6 : f32
    %100 = vector.broadcast %cst_46 : f32 to vector<1x256xf32>
    %101 = arith.addf %98, %100 : vector<1x256xf32>
    %102 = math.rsqrt %101 : vector<1x256xf32>
    %103 = arith.mulf %99, %102 : vector<1x256xf32>
    %104 = vector.extract_strided_slice %96 {offsets = [1, 0], sizes = [1, 256], strides = [1, 1]} : vector<2x256xf32> to vector<1x256xf32>
    %105 = arith.mulf %91, %103 : vector<1x256xf32>
    %106 = arith.subf %104, %105 : vector<1x256xf32>
    %107 = vector.broadcast %103 : vector<1x256xf32> to vector<16x256xf32>
    %108 = arith.mulf %87, %107 : vector<16x256xf32>
    %109 = vector.broadcast %106 : vector<1x256xf32> to vector<16x256xf32>
    %110 = arith.addf %108, %109 : vector<16x256xf32>
    %cst_47 = arith.constant 0.000000e+00 : f32
    %111 = vector.broadcast %cst_47 : f32 to vector<16x256xf32>
    %112 = arith.maximumf %110, %111 : vector<16x256xf32>
    %113 = arith.truncf %112 : vector<16x256xf32> to vector<16x256xbf16>
    %c0_48 = arith.constant 0 : index
    %c0_49 = arith.constant 0 : index
    %114 = vector.load %arg9[%c0_48, %c0_49] : memref<256x256xbf16, #tpu.memory_space<vmem>>, vector<256x256xbf16>
    %cst_50 = arith.constant dense<0.000000e+00> : vector<16x256xf32>
    %115 = tpu.matmul %113, %114, %cst_50 {dimension_numbers = #tpu.dot_dimension_numbers<[1], [0], [0], [1], [0, 0, 1, 1], [], []>} : vector<16x256xbf16>, vector<256x256xbf16>, vector<16x256xf32> -> vector<16x256xf32>
    %c0_51 = arith.constant 0 : index
    %c0_52 = arith.constant 0 : index
    %116 = vector.load %arg10[%c0_51, %c0_52] : memref<1x256xf32, #tpu.memory_space<vmem>>, vector<1x256xf32>
    %117 = vector.broadcast %116 : vector<1x256xf32> to vector<16x256xf32>
    %118 = arith.addf %115, %117 : vector<16x256xf32>
    %cst_53 = arith.constant 5.000000e-01 : f32
    %119 = vector.broadcast %cst_53 : f32 to vector<16x256xf32>
    %120 = arith.mulf %119, %118 : vector<16x256xf32>
    %121 = math.tanh %120 : vector<16x256xf32>
    %cst_54 = arith.constant 5.000000e-01 : f32
    %122 = vector.broadcast %cst_54 : f32 to vector<16x256xf32>
    %123 = arith.mulf %122, %121 : vector<16x256xf32>
    %cst_55 = arith.constant 5.000000e-01 : f32
    %124 = vector.broadcast %cst_55 : f32 to vector<16x256xf32>
    %125 = arith.addf %123, %124 : vector<16x256xf32>
    %126 = arith.truncf %125 : vector<16x256xf32> to vector<16x256xbf16>
    %c0_56 = arith.constant 0 : index
    %c0_57 = arith.constant 0 : index
    %127 = vector.load %arg11[%c0_56, %c0_57] : memref<16x256xbf16, #tpu.memory_space<vmem>>, vector<16x256xbf16>
    tpu.vector_store %arg11[%c0_56, %c0_57], %126 {strides = array<i32>} : memref<16x256xbf16, #tpu.memory_space<vmem>>, vector<16x256xbf16>,
    return
  }
}

</mosaic_0001>

<bundles_post_ra>
// kernel: generator_forward_fused.1
= control target key start
LH: loop header
LB: loop body
LE: loop exit
PB: predicated region body
PF: predicated region fallthrough
CT: control target
= control target key end

     0   :  { %16 = vsyncpa [#allocation3], 0  ;;  %s2438_s0 = inlined_call_operand.hbm [shape: f32[16,10], index: 0, kind: input, shape index: {}]   ;;  %s2439_s1 = inlined_call_operand.hbm [shape: bf16[10,32], index: 1, kind: input, shape index: {}]   ;;  %s2440_s2 = inlined_call_operand.vmem [shape: f32[2,32], index: 2, kind: input, shape index: {}]   ;;  %s2441_s3 = inlined_call_operand.hbm [shape: bf16[32,64], index: 3, kind: input, shape index: {}]   ;;  %s2442_s4 = inlined_call_operand.hbm [shape: f32[2,64], index: 4, kind: input, shape index: {}]   ;;  %s2443_s5 = inlined_call_operand.vmem [shape: bf16[64,128], index: 5, kind: input, shape index: {}]   ;;  %s2444_s6 = inlined_call_operand.hbm [shape: f32[2,128], index: 6, kind: input, shape index: {}]   ;;  %s2445_s7 = inlined_call_operand.hbm [shape: bf16[128,256], index: 7, kind: input, shape index: {}]   ;;  %s2446_s8 = inlined_call_operand.hbm [shape: f32[2,256], index: 8, kind: input, shape index: {}]   ;;  %s2447_s9 = inlined_call_operand.hbm [shape: bf16[256,256], index: 9, kind: input, shape index: {}]   ;;  %s2448_s10 = inlined_call_operand.hbm [shape: f32[1,256], index: 10, kind: input, shape index: {}]   ;;  %s2449_s11 = inlined_call_operand.hbm [shape: bf16[16,256], index: 11, kind: output, shape index: {}]  }
   0x1   :  { %17 = vsyncpa [#allocation6], 0 }
   0x2   :  { %18 = vsyncpa [#allocation9], 0 }
   0x3   :  { %19 = vsyncpa [#allocation12], 0 }
   0x4   :  { %20 = vsyncpa [#allocation15], 0 }
   0x5   :  { %21 = vsyncpa [#allocation4], 0  ;;  %s2081_s17 = smov [#allocation5]   ;;  %s1849_s21 = scalar_lea.hbm %s2439_s1, 128 }
   0x6   :  { %s39_s18 = sshll.u32 %s2081_s17, 4  ;;  %p1850_p0 = scmp.ne.s32.totalorder %s2439_s1, %s1849_s21  ;;  %s40_s18 = int_to_ptr.vmem [resolvable:$true] %s39_s18 }
   0x7   :  { %p1853_p1 = scmp.lt.u32.totalorder %s1849_s21, %s2439_s1 }
   0x9   :  { %p1855_p2 = pnand %p1853_p1, %p1850_p0 }
   0xb   :  { %1858 = shalt.err (!%p1855_p2)
}
   0xc   :  { %s1859_s26 = scalar_lea.vmem %s40_s18, 128  ;;  %p1864_p4 = scmp.lt.s32.totalorder %s40_s18, %s40_s18 }
   0xd   :  { %p1860_p3 = scmp.ne.s32.totalorder %s40_s18, %s1859_s26  ;;  %p1865_p5 = scmp.lt.s32.totalorder %s1859_s26, %s1859_s26 }
   0xf   :  { %p1866_p6 = por %p1865_p5, %p1864_p4 }
  0x11   :  { %p1867_p7 = pnand %p1866_p6, %p1860_p3 }
  0x13   :  { %1870 = shalt.err (!%p1867_p7)
}
  0x14   :  { %s2082_s27 = smov 64   ;;  %s2083_s28 = smov 4  }
  0x15   :  { %45 = dma.hbm_to_vmem [thread:$0]  %s2439_s1, 128, %s40_s18, [#allocation6], %s2082_s27, %s2082_s27, %s2083_s28  }
  0x16   :  { %s2084_s12 = smov [#allocation8]   ;;  %s1871_s16 = scalar_lea.hbm %s2442_s4, 32 }
  0x17   :  { %s66_s13 = sshll.u32 %s2084_s12, 4  ;;  %p1872_p8 = scmp.ne.s32.totalorder %s2442_s4, %s1871_s16  ;;  %s67_s13 = int_to_ptr.vmem [resolvable:$true] %s66_s13 }
  0x18   :  { %p1875_p9 = scmp.lt.u32.totalorder %s1871_s16, %s2442_s4 }
  0x1a   :  { %p1877_p10 = pnand %p1875_p9, %p1872_p8 }
  0x1c   :  { %1880 = shalt.err (!%p1877_p10)
}
  0x1d   :  { %s1881_s22 = scalar_lea.vmem %s67_s13, 32  ;;  %p1886_p12 = scmp.lt.s32.totalorder %s67_s13, %s67_s13 }
  0x1e   :  { %p1882_p11 = scmp.ne.s32.totalorder %s67_s13, %s1881_s22  ;;  %p1887_p13 = scmp.lt.s32.totalorder %s1881_s22, %s1881_s22 }
  0x20   :  { %p1888_p0 = por %p1887_p13, %p1886_p12 }
  0x22   :  { %p1889_p1 = pnand %p1888_p0, %p1882_p11 }
  0x24   :  { %1892 = shalt.err (!%p1889_p1)
}
  0x25   :  { %69 = dma.hbm_to_vmem [thread:$0]  %s2442_s4, 32, %s67_s13, [#allocation9]  }
  0x26   :  { %s2085_s23 = smov [#allocation11]   ;;  %s2086_s25 = smov [#allocation14]  }
  0x27   :  { %s87_s24 = sshll.u32 %s2085_s23, 4  ;;  %s109_s26 = sshll.u32 %s2086_s25, 4  ;;  %s88_s24 = int_to_ptr.vmem [resolvable:$true] %s87_s24  ;;  %s2188_s26 = int_to_ptr.vmem [resolvable:$true] %s109_s26 }
  0x28   :  { %s1893_s12 = scalar_lea.hbm %s2445_s7, 2048 }
  0x29   :  { %p1894_p2 = scmp.ne.s32.totalorder %s2445_s7, %s1893_s12  ;;  %p1897_p3 = scmp.lt.u32.totalorder %s1893_s12, %s2445_s7 }
  0x2b   :  { %p1899_p4 = pnand %p1897_p3, %p1894_p2 }
  0x2d   :  { %1902 = shalt.err (!%p1899_p4)
}
  0x2e   :  { %s1903_s4 = scalar_lea.vmem %s88_s24, 2048  ;;  %p1908_p6 = scmp.lt.s32.totalorder %s88_s24, %s88_s24 }
  0x2f   :  { %p1904_p5 = scmp.ne.s32.totalorder %s88_s24, %s1903_s4  ;;  %p1909_p7 = scmp.lt.s32.totalorder %s1903_s4, %s1903_s4 }
  0x31   :  { %p1910_p8 = por %p1909_p7, %p1908_p6 }
  0x33   :  { %p1911_p9 = pnand %p1910_p8, %p1904_p5 }
  0x35   :  { %1914 = shalt.err (!%p1911_p9)
}
  0x36   :  { %s2087_s13 = smov 128   ;;  %s2088_s19 = smov 8  }
  0x37   :  { %93 = dma.hbm_to_vmem [thread:$0]  %s2445_s7, 2048, %s88_s24, [#allocation12], %s2087_s13, %s2087_s13, %s2088_s19  }
  0x38   :  { %s1915_s18 = scalar_lea.hbm %s2447_s9, 4096 }
  0x39   :  { %p1916_p10 = scmp.ne.s32.totalorder %s2447_s9, %s1915_s18  ;;  %p1919_p11 = scmp.lt.u32.totalorder %s1915_s18, %s2447_s9 }
  0x3b   :  { %p1921_p12 = pnand %p1919_p11, %p1916_p10 }
  0x3d   :  { %1924 = shalt.err (!%p1921_p12)
}
  0x3e   :  { %s1925_s12 = scalar_lea.vmem %s2188_s26, 4096  ;;  %p1930_p0 = scmp.lt.s32.totalorder %s2188_s26, %s2188_s26 }
  0x3f   :  { %p1926_p13 = scmp.ne.s32.totalorder %s2188_s26, %s1925_s12  ;;  %p1931_p1 = scmp.lt.s32.totalorder %s1925_s12, %s1925_s12 }
  0x41   :  { %p1932_p2 = por %p1931_p1, %p1930_p0 }
  0x43   :  { %p1933_p3 = pnand %p1932_p2, %p1926_p13 }
  0x45   :  { %1936 = shalt.err (!%p1933_p3)
}
  0x46   :  { %115 = dma.hbm_to_vmem [thread:$0]  %s2447_s9, 4096, %s2188_s26, [#allocation15], %s2087_s13, %s2087_s13, %s2088_s19  }
  0x47   :  { %s2089_s14 = smov [#allocation2]   ;;  %s2090_s16 = smov [#allocation7]  }
  0x48   :  { %s27_s15 = sshll.u32 %s2089_s14, 4  ;;  %s53_s17 = sshll.u32 %s2090_s16, 4  ;;  %s28_s15 = int_to_ptr.vmem [resolvable:$true] %s27_s15  ;;  %s2225_s17 = int_to_ptr.vmem [resolvable:$true] %s53_s17 }
  0x49   :  { %s1937_s21 = scalar_lea.hbm %s2438_s0, 256 }
  0x4a   :  { %p1938_p4 = scmp.ne.s32.totalorder %s2438_s0, %s1937_s21  ;;  %p1941_p5 = scmp.lt.u32.totalorder %s1937_s21, %s2438_s0 }
  0x4c   :  { %p1943_p6 = pnand %p1941_p5, %p1938_p4 }
  0x4e   :  { %1946 = shalt.err (!%p1943_p6)
}
  0x4f   :  { %s1947_s9 = scalar_lea.vmem %s28_s15, 256  ;;  %p1952_p8 = scmp.lt.s32.totalorder %s28_s15, %s28_s15 }
  0x50   :  { %p1948_p7 = scmp.ne.s32.totalorder %s28_s15, %s1947_s9  ;;  %p1953_p9 = scmp.lt.s32.totalorder %s1947_s9, %s1947_s9 }
  0x52   :  { %p1954_p10 = por %p1953_p9, %p1952_p8 }
  0x54   :  { %p1955_p11 = pnand %p1954_p10, %p1948_p7 }
  0x56   :  { %1958 = shalt.err (!%p1955_p11)
}
  0x57   :  { %33 = dma.hbm_to_vmem [thread:$0]  %s2438_s0, 256, %s28_s15, [#allocation3], %s2087_s13, %s2087_s13, %s2088_s19  }
  0x58   :  { %s1959_s12 = scalar_lea.hbm %s2441_s3, 256 }
  0x59   :  { %p1960_p12 = scmp.ne.s32.totalorder %s2441_s3, %s1959_s12  ;;  %p1963_p13 = scmp.lt.u32.totalorder %s1959_s12, %s2441_s3 }
  0x5b   :  { %p1965_p0 = pnand %p1963_p13, %p1960_p12 }
  0x5d   :  { %1968 = shalt.err (!%p1965_p0)
}
  0x5e   :  { %s1969_s4 = scalar_lea.vmem %s2225_s17, 256  ;;  %p1974_p2 = scmp.lt.s32.totalorder %s2225_s17, %s2225_s17 }
  0x5f   :  { %p1970_p1 = scmp.ne.s32.totalorder %s2225_s17, %s1969_s4  ;;  %p1975_p3 = scmp.lt.s32.totalorder %s1969_s4, %s1969_s4 }
  0x61   :  { %p1976_p4 = por %p1975_p3, %p1974_p2 }
  0x63   :  { %p1977_p5 = pnand %p1976_p4, %p1970_p1 }
  0x65   :  { %1980 = shalt.err (!%p1977_p5)
}
  0x66   :  { %59 = dma.hbm_to_vmem [thread:$0]  %s2441_s3, 256, %s2225_s17, [#allocation6], %s2082_s27, %s2082_s27, %s2083_s28  }
  0x67   :  { %s2091_s20 = smov [#allocation10]   ;;  %s2092_s22 = smov [#allocation13]  }
  0x68   :  { %s78_s21 = sshll.u32 %s2091_s20, 4  ;;  %s100_s1 = sshll.u32 %s2092_s22, 4  ;;  %s79_s21 = int_to_ptr.vmem [resolvable:$true] %s78_s21  ;;  %s101_s1 = int_to_ptr.vmem [resolvable:$true] %s100_s1 }
  0x69   :  { %s1981_s9 = scalar_lea.hbm %s2444_s6, 32 }
  0x6a   :  { %p1982_p6 = scmp.ne.s32.totalorder %s2444_s6, %s1981_s9  ;;  %p1985_p7 = scmp.lt.u32.totalorder %s1981_s9, %s2444_s6 }
  0x6c   :  { %p1987_p8 = pnand %p1985_p7, %p1982_p6 }
  0x6e   :  { %1990 = shalt.err (!%p1987_p8)
}
  0x6f   :  { %s1991_s3 = scalar_lea.vmem %s79_s21, 32  ;;  %p1996_p10 = scmp.lt.s32.totalorder %s79_s21, %s79_s21 }
  0x70   :  { %p1992_p9 = scmp.ne.s32.totalorder %s79_s21, %s1991_s3  ;;  %p1997_p11 = scmp.lt.s32.totalorder %s1991_s3, %s1991_s3 }
  0x72   :  { %p1998_p12 = por %p1997_p11, %p1996_p10 }
  0x74   :  { %p1999_p13 = pnand %p1998_p12, %p1992_p9 }
  0x76   :  { %2002 = shalt.err (!%p1999_p13)
}
  0x77   :  { %81 = dma.hbm_to_vmem [thread:$0]  %s2444_s6, 32, %s79_s21, [#allocation9]  }
  0x78   :  { %s2003_s7 = scalar_lea.hbm %s2446_s8, 64 }
  0x79   :  { %p2004_p0 = scmp.ne.s32.totalorder %s2446_s8, %s2003_s7  ;;  %p2007_p1 = scmp.lt.u32.totalorder %s2003_s7, %s2446_s8 }
  0x7b   :  { %p2009_p2 = pnand %p2007_p1, %p2004_p0 }
  0x7d   :  { %2012 = shalt.err (!%p2009_p2)
}
  0x7e   :  { %s2013_s0 = scalar_lea.vmem %s101_s1, 64  ;;  %p2018_p4 = scmp.lt.s32.totalorder %s101_s1, %s101_s1 }
  0x7f   :  { %p2014_p3 = scmp.ne.s32.totalorder %s101_s1, %s2013_s0  ;;  %p2019_p5 = scmp.lt.s32.totalorder %s2013_s0, %s2013_s0 }
  0x81   :  { %p2020_p6 = por %p2019_p5, %p2018_p4 }
  0x83   :  { %p2021_p7 = pnand %p2020_p6, %p2014_p3 }
  0x85   :  { %2024 = shalt.err (!%p2021_p7)
}
  0x86   :  { %103 = dma.hbm_to_vmem [thread:$0]  %s2446_s8, 64, %s101_s1, [#allocation12]  }
  0x87   :  { %s2093_s20 = smov [#allocation16]   ;;  %s2025_s23 = scalar_lea.hbm %s2448_s10, 32 }
  0x88   :  { %s122_s21 = sshll.u32 %s2093_s20, 4  ;;  %p2026_p8 = scmp.ne.s32.totalorder %s2448_s10, %s2025_s23  ;;  %s123_s21 = int_to_ptr.vmem [resolvable:$true] %s122_s21 }
  0x89   :  { %p2029_p9 = scmp.lt.u32.totalorder %s2025_s23, %s2448_s10 }
  0x8b   :  { %p2031_p10 = pnand %p2029_p9, %p2026_p8 }
  0x8d   :  { %2034 = shalt.err (!%p2031_p10)
}
  0x8e   :  { %s2035_s30 = scalar_lea.vmem %s123_s21, 32  ;;  %p2040_p12 = scmp.lt.s32.totalorder %s123_s21, %s123_s21 }
  0x8f   :  { %p2036_p11 = scmp.ne.s32.totalorder %s123_s21, %s2035_s30  ;;  %p2041_p13 = scmp.lt.s32.totalorder %s2035_s30, %s2035_s30 }
  0x91   :  { %p2042_p0 = por %p2041_p13, %p2040_p12 }
  0x93   :  { %p2043_p1 = pnand %p2042_p0, %p2036_p11 }
  0x95   :  { %2046 = shalt.err (!%p2043_p1)
}
  0x96   :  { %125 = dma.hbm_to_vmem [thread:$0]  %s2448_s10, 32, %s123_s21, [#allocation15]  }
  0x97   :  { %2069 = dma.done.wait [#allocation3], 256  }
  0x98   :  { %2070 = vsyncadd [#allocation3], 4294967040 }
  0x99   :  { %2071 = dma.done.wait [#allocation6], 384  }
  0x9a   :  { %2072 = vsyncadd [#allocation6], 4294966912 }
  0x9b   :  { %2073 = dma.done.wait [#allocation9], 64  }
  0x9c   :  { %2074 = vsyncadd [#allocation9], 4294967232 }
  0x9d   :  { %2075 = dma.done.wait [#allocation12], 2112  }
  0x9e   :  { %2076 = vsyncadd [#allocation12], 4294965184 }
  0x9f   :  { %2077 = dma.done.wait [#allocation15], 4128  }
  0xa0   :  { %2078 = vsyncadd [#allocation15], 4294963168  ;;  %v2094_v0 = vmov 0.0   ;;  %vm2095_vm0 = vmmov 0   ;;  %vm168_vm1 = vcmask 1044480   ;;  %v154_v2 = vld [vmem:[#allocation2] sm:$0xff]  ;;  %v372_v27 = vlaneseq }
  0xa1   :  { %1638 = vmatprep.subr.bf16.mxu1 %v2094_v0  ;;  %1640 = vmatprep.mubr.msk.bf16.mxu1 %vm2095_vm0, %v2094_v0  ;;  %v1752_v1 = vld [vmem:[#allocation5] sm:$0x1f]   ;;  %v155_v3 = vld [vmem:[#allocation2 + $0x8] sm:$0xff]  ;;  %vm164_vm2 = vcmask 80896   ;;  %v2096_v6 = vmov 0.0|0.0   ;;  %vm213_vm3 = vcmask 130048  }
  0xa2   :  { %1658 = vmatprep.subr.bf16.mxu0 %v2094_v0  ;;  %1662 = vmatprep.mubr.msk.bf16.mxu0 %vm2095_vm0, %v2094_v0  ;;  %v170_v4 = vsel %vm168_vm1, %v1752_v1, 0  ;;  %v156_v5 = vpack.c.bf16 %v155_v3, %v154_v2  ;;  %v2097_v15 = vmov 1.0   ;;  %v1753_v16 = vld [vmem:[#allocation7] sm:$0xff]   ;;  %v1754_v17 = vld [vmem:[#allocation7 + $0x8] sm:$0xff]   ;;  %v2318_v28 = vshrl.u32 %v372_v27, 7  ;;  %v1756_v55 = vld [vmem:[%s2443_s5 + $0x8] sm:$0xff]  }
  0xa3   :  { %1639 = vmatpush3.bf16.msra.mxu1 %v170_v4  ;;  %1659 = vmatpush3.bf16.msra.mxu0 %v1753_v16  ;;  %v361_v29 = vld [vmem:[%s2440_s2] sm:$0x3]  ;;  %vm403_vm4 = vcmask 261120   ;;  %v1757_v56 = vld [vmem:[%s2443_s5 + $0x10] sm:$0xff]   ;;  %v1758_v57 = vld [vmem:[%s2443_s5 + $0x18] sm:$0xff]   ;;  %vm650_vm5 = vcmask 523264  }
  0xa4   :  { %1706 = vmatprep.subr.bf16.mxu1 %v2096_v6  ;;  %1660 = vmatprep.subr.bf16.mxu0 %v2094_v0  ;;  %v2324_v30 = vsub.s32 0, %v2318_v28  ;;  %v2328_v38 = vsub.s32 1, %v2318_v28  ;;  %v1755_v54 = vld [vmem:[%s2443_s5] sm:$0xff]   ;;  %v592_v4 = vld [vmem:[#allocation8] sm:$0x3]  ;;  %s2100_s5 = smov [#allocation17]  }
  0xa5   :  { %s1524_s16 = sshll.u32 %s2100_s5, 4  ;;  %s1525_s16 = int_to_ptr.vmem [resolvable:$true] %s1524_s16 }
  0xa6   :  { %1641 = vmatmul.mubr.msk.bf16.vlgmr.msra.gmra.mrb[0].mxu1 %vm164_vm2, %v156_v5  ;;  %s2047_s4 = scalar_lea.vmem %s1525_s16, 256  ;;  %p2052_p3 = scmp.lt.s32.totalorder %s1525_s16, %s1525_s16 }
  0xa7   :  { %1648 = vmatprep.mubr.msk.f32.mxu1 %vm2095_vm0, %v2094_v0  ;;  %1661 = vmatpush3.bf16.msra.mxu0 %v1754_v17  ;;  %p2048_p2 = scmp.ne.s32.totalorder %s1525_s16, %s2047_s4  ;;  %p2053_p4 = scmp.lt.s32.totalorder %s2047_s4, %s2047_s4 }
  0xa9   :  { %p2054_p5 = por %p2053_p4, %p2052_p3 }
  0xab   :  { %p2055_p6 = pnand %p2054_p5, %p2048_p2 }
 0x179   :  { %v206_v7 = vpop.f32.mrb[0].mxu1 }
 0x17a   :  { %v1642_v8 = vpop.f32.mrb[1].mxu1  ;;  %v288_v10 = vmul.f32 %v206_v7, %v206_v7 }
 0x17b   :  { %v209_v9 = vpop.f32.mrb[2].mxu1 }
 0x17c   :  { %v1707_v11 = vpack.c.bf16 %v209_v9, %v206_v7  ;;  %v289_v12 = vmul.f32 %v209_v9, %v209_v9  ;;  %v1643_v13 = vpop.f32.mrb[3].mxu1 }
 0x17e   :  { %v1710_v14 = vpack.c.bf16 %v289_v12, %v288_v10  ;;  %1708 = vmatpush3.bf16.msra.mxu1 %v1707_v11 }
 0x17f   :  { %1709 = vmatprep.subr.bf16.mxu1 %v2096_v6 }
 0x181   :  { %1649 = vmatmul.mubr.msk.f32.vlgmr.msra.gmra.mrb[4].mxu1 %vm213_vm3, %v2097_v15 }
 0x182   :  { %1711 = vmatpush3.bf16.msra.mxu1 %v1710_v14  ;;  %1655 = vmatprep.mubr.msk.f32.mxu1 %vm2095_vm0, %v2094_v0 }
 0x183   :  { %1712 = vmatprep.subr.bf16.mxu1 %v2096_v6 }
 0x185   :  { %1656 = vmatmul.mubr.msk.f32.vlgmr.msra.gmra.mrb[6].mxu1 %vm213_vm3, %v2097_v15 }
 0x186   :  { %1670 = vmatprep.mubr.msk.f32.mxu1 %vm2095_vm0, %v2094_v0 }
 0x254   :  { %v283_v18 = vpop.f32.mrb[4].mxu1 }
 0x255   :  { %v287_v19 = vmul.f32 0.0625, %v283_v18  ;;  %v1650_v20 = vpop.f32.mrb[5].mxu1 }
 0x257   :  { %v362_v22 = vmul.f32 %v287_v19, %v287_v19 }
 0x258   :  { %v356_v21 = vpop.f32.mrb[6].mxu1 }
 0x259   :  { %v360_v23 = vmul.f32 0.0625, %v356_v21  ;;  %v1657_v24 = vpop.f32.mrb[7].mxu1 }
 0x25b   :  { %v363_v25 = vsub.f32 %v360_v23, %v362_v22 }
 0x25d   :  { %v364_v26 = vadd.f32 1e-05, %v363_v25 }
 0x25f   :  { %1831 = vrsqrt.f32 %v364_v26 }
 0x269   :  { %v1832_v31 = vpop.eup %1831 }
 0x26a   :  { %v366_v32 = vmul.f32 %v1832_v31, %v361_v29  ;;  %v1761_v31 = vld [vmem:[#allocation11 + $0x4] ss:$8 sps:$4 sm:$0xff]  }
 0x26c   :  { %v367_v33 = vmul.f32 %v366_v32, %v287_v19  ;;  %v375_v34 = vrot.slane %v366_v32, %v2324_v30  ;;  %v1759_v32 = vld [vmem:[#allocation11] ss:$8 sps:$4 sm:$0xff]  }
 0x26e   :  { %v369_v35 = vrot.slane %v367_v33, 7  ;;  %v376_v36 = vmul.f32 %v375_v34, %v206_v7  ;;  %v377_v37 = vmul.f32 %v375_v34, %v209_v9  ;;  %v1764_v33 = vld [vmem:[#allocation11 + $0x14] ss:$8 sps:$4 sm:$0xff]   ;;  %v1762_v34 = vld [vmem:[#allocation11 + $0x10] ss:$8 sps:$4 sm:$0xff]  }
 0x270   :  { %v371_v39 = vsub.f32 %v361_v29, %v369_v35  ;;  %v1767_v35 = vld [vmem:[#allocation11 + $0x24] ss:$8 sps:$4 sm:$0xff]  }
 0x272   :  { %v381_v40 = vrot.slane %v371_v39, %v2328_v38  ;;  %v1773_v39 = vld [vmem:[#allocation11 + $0x44] ss:$8 sps:$4 sm:$0xff]  }
 0x274   :  { %v382_v41 = vadd.f32 %v381_v40, %v376_v36  ;;  %v383_v42 = vadd.f32 %v381_v40, %v377_v37  ;;  %v1770_v36 = vld [vmem:[#allocation11 + $0x34] ss:$8 sps:$4 sm:$0xff]   ;;  %v1768_v37 = vld [vmem:[#allocation11 + $0x30] ss:$8 sps:$4 sm:$0xff]   ;;  %v1771_v40 = vld [vmem:[#allocation11 + $0x40] ss:$8 sps:$4 sm:$0xff]  }
 0x276   :  { %v384_v43 = vmax.f32 %v382_v41, 0.0  ;;  %v385_v44 = vmax.f32 %v383_v42, 0.0  ;;  %v1776_v41 = vld [vmem:[#allocation11 + $0x54] ss:$8 sps:$4 sm:$0xff]   ;;  %v1774_v42 = vld [vmem:[#allocation11 + $0x50] ss:$8 sps:$4 sm:$0xff]  }
 0x278   :  { %v386_v45 = vpack.c.bf16 %v385_v44, %v384_v43  ;;  %v1779_v43 = vld [vmem:[#allocation11 + $0x64] ss:$8 sps:$4 sm:$0xff]   ;;  %v2098_v44 = vmov 0  }
 0x27a   :  { %1663 = vmatmul.mubr.msk.bf16.vlgmr.msra.gmra.mrb[0].mxu0 %vm403_vm4, %v386_v45  ;;  %v1777_v45 = vld [vmem:[#allocation11 + $0x60] ss:$8 sps:$4 sm:$0xff]  }
 0x27b   :  { %1068 = vmatprep.mubr.f32.mxu0 %v2094_v0 }
 0x34d   :  { %v441_v46 = vpop.f32.mrb[0].mxu0 }
 0x34e   :  { %v1664_v47 = vpop.f32.mrb[1].mxu0  ;;  %v519_v49 = vmul.f32 %v441_v46, %v441_v46 }
 0x34f   :  { %v444_v48 = vpop.f32.mrb[2].mxu0  ;;  %v1780_v47 = vld [vmem:[#allocation11 + $0x70] ss:$8 sps:$4 sm:$0xff]  }
 0x350   :  { %v1713_v50 = vpack.c.bf16 %v444_v48, %v441_v46  ;;  %v520_v51 = vmul.f32 %v444_v48, %v444_v48  ;;  %v1665_v52 = vpop.f32.mrb[3].mxu0 }
 0x352   :  { %v1716_v53 = vpack.c.bf16 %v520_v51, %v519_v49  ;;  %1714 = vmatpush3.bf16.msra.mxu1 %v1713_v50 }
 0x353   :  { %1715 = vmatprep.subr.bf16.mxu1 %v2096_v6 }
 0x355   :  { %1671 = vmatmul.mubr.msk.f32.vlgmr.msra.gmra.mrb[8].mxu1 %vm213_vm3, %v2097_v15 }
 0x356   :  { %1717 = vmatpush3.bf16.msra.mxu1 %v1716_v53  ;;  %1677 = vmatprep.mubr.msk.f32.mxu1 %vm2095_vm0, %v2094_v0 }
 0x357   :  { %1680 = vmatprep.subr.bf16.mxu1 %v2094_v0 }
 0x359   :  { %1678 = vmatmul.mubr.msk.f32.vlgmr.msra.gmra.mrb[10].mxu1 %vm213_vm3, %v2097_v15 }
 0x35a   :  { %1688 = vmatprep.mubr.msk.bf16.mxu1 %vm2095_vm0, %v2094_v0  ;;  %1681 = vmatpush3.bf16.msra.mxu1 %v1755_v54 }
 0x35b   :  { %1682 = vmatprep.subr.bf16.mxu1 %v2094_v0 }
 0x35e   :  { %1683 = vmatpush3.bf16.msra.mxu1 %v1756_v55 }
 0x35f   :  { %1684 = vmatprep.subr.bf16.mxu1 %v2094_v0 }
 0x362   :  { %1685 = vmatpush3.bf16.msra.mxu1 %v1757_v56 }
 0x363   :  { %1686 = vmatprep.subr.bf16.mxu1 %v2094_v0 }
 0x366   :  { %1687 = vmatpush3.bf16.msra.mxu1 %v1758_v57  ;;  %v839_v57 = vld [vmem:[#allocation10] sm:$0x3] }
 0x367   :  { %1718 = vmatprep.subr.bf16.mxu1 %v2096_v6 }
 0x428   :  { %v514_v58 = vpop.f32.mrb[8].mxu1 }
 0x429   :  { %v518_v59 = vmul.f32 0.0625, %v514_v58  ;;  %v1672_v60 = vpop.f32.mrb[9].mxu1 }
 0x42b   :  { %v593_v62 = vmul.f32 %v518_v59, %v518_v59 }
 0x42c   :  { %v587_v61 = vpop.f32.mrb[10].mxu1 }
 0x42d   :  { %v591_v63 = vmul.f32 0.0625, %v587_v61  ;;  %v1679_v1 = vpop.f32.mrb[11].mxu1 }
 0x42f   :  { %v594_v2 = vsub.f32 %v591_v63, %v593_v62 }
 0x431   :  { %v595_v3 = vadd.f32 1e-05, %v594_v2 }
 0x433   :  { %1833 = vrsqrt.f32 %v595_v3 }
 0x43d   :  { %v1834_v5 = vpop.eup %1833 }
 0x43e   :  { %v597_v7 = vmul.f32 %v1834_v5, %v592_v4 }
 0x440   :  { %v598_v8 = vmul.f32 %v597_v7, %v518_v59  ;;  %v606_v9 = vrot.slane %v597_v7, %v2324_v30 }
 0x442   :  { %v600_v10 = vrot.slane %v598_v8, 7  ;;  %v607_v11 = vmul.f32 %v606_v9, %v441_v46  ;;  %v608_v12 = vmul.f32 %v606_v9, %v444_v48  ;;  %v1782_v46 = vld [vmem:[#allocation11 + $0x74] ss:$8 sps:$4 sm:$0xff]  }
 0x444   :  { %v602_v13 = vsub.f32 %v592_v4, %v600_v10 }
 0x446   :  { %v612_v14 = vrot.slane %v602_v13, %v2328_v38 }
 0x448   :  { %v613_v16 = vadd.f32 %v612_v14, %v607_v11  ;;  %v614_v17 = vadd.f32 %v612_v14, %v608_v12 }
 0x44a   :  { %v615_v18 = vmax.f32 %v613_v16, 0.0  ;;  %v616_v19 = vmax.f32 %v614_v17, 0.0 }
 0x44c   :  { %v617_v20 = vpack.c.bf16 %v616_v19, %v615_v18 }
 0x44e   :  { %1689 = vmatmul.mubr.msk.bf16.vlgmr.msra.gmra.mrb[12].mxu1 %vm650_vm5, %v617_v20 }
 0x44f   :  { %1696 = vmatprep.mubr.msk.f32.mxu1 %vm2095_vm0, %v2094_v0 }
 0x521   :  { %v2362_v21 = vpop.f32.mrb[12].mxu1 }
 0x522   :  { %v1690_v22 = vpop.f32.mrb[13].mxu1  ;;  %v766_v24 = vmul.f32 %v2362_v21, %v2362_v21 }
 0x523   :  { %v2364_v23 = vpop.f32.mrb[14].mxu1 }
 0x524   :  { %v1719_v25 = vpack.c.bf16 %v2364_v23, %v2362_v21  ;;  %v767_v26 = vmul.f32 %v2364_v23, %v2364_v23  ;;  %v1691_v27 = vpop.f32.mrb[15].mxu1 }
 0x525   :  { %v1791_v27 = vld [vmem:[#allocation14 + $0x24] ss:$8 sps:$4 sm:$0xff]  }
 0x526   :  { %v1722_v29 = vpack.c.bf16 %v767_v26, %v766_v24  ;;  %1720 = vmatpush3.bf16.msra.mxu1 %v1719_v25  ;;  %v1783_v24 = vld [vmem:[#allocation14] ss:$8 sps:$4 sm:$0xff]   ;;  %v1788_v25 = vld [vmem:[#allocation14 + $0x14] ss:$8 sps:$4 sm:$0xff]   ;;  %v1786_v26 = vld [vmem:[#allocation14 + $0x10] ss:$8 sps:$4 sm:$0xff]  }
 0x527   :  { %1721 = vmatprep.subr.bf16.mxu1 %v2096_v6  ;;  %v1765_v6 = vld [vmem:[#allocation11 + $0x20] ss:$8 sps:$4 sm:$0xff]  }
 0x529   :  { %1697 = vmatmul.mubr.msk.f32.vlgmr.msra.gmra.mrb[16].mxu1 %vm213_vm3, %v2097_v15 }
 0x52a   :  { %1723 = vmatpush3.bf16.msra.mxu1 %v1722_v29  ;;  %1703 = vmatprep.mubr.msk.f32.mxu1 %vm2095_vm0, %v2094_v0  ;;  %v1789_v29 = vld [vmem:[#allocation14 + $0x20] ss:$8 sps:$4 sm:$0xff]  }
 0x52b   :  { %961 = vmatprep.subr.bf16.mxu1 %v1761_v31  ;;  %v1794_v31 = vld [vmem:[#allocation14 + $0x34] ss:$8 sps:$4 sm:$0xff]  }
 0x52d   :  { %1704 = vmatmul.mubr.msk.f32.vlgmr.msra.gmra.mrb[18].mxu1 %vm213_vm3, %v2097_v15 }
 0x52e   :  { %962 = vmatpush1.bf16.msra.mxu1 %v1759_v32  ;;  %993 = vmatprep.mubr.bf16.mxu1 %v2098_v44  ;;  %v1792_v32 = vld [vmem:[#allocation14 + $0x30] ss:$8 sps:$4 sm:$0xff]   ;;  %v1813_v44 = vld [vmem:[#allocation14 + $0xa0] ss:$8 sps:$4 sm:$0xff]  }
 0x52f   :  { %963 = vmatprep.subr.bf16.mxu1 %v1764_v33  ;;  %v1797_v33 = vld [vmem:[#allocation14 + $0x44] ss:$8 sps:$4 sm:$0xff]  }
 0x532   :  { %964 = vmatpush1.bf16.msra.mxu1 %v1762_v34  ;;  %v1800_v34 = vld [vmem:[#allocation14 + $0x54] ss:$8 sps:$4 sm:$0xff]  }
 0x533   :  { %965 = vmatprep.subr.bf16.mxu1 %v1767_v35  ;;  %v1798_v35 = vld [vmem:[#allocation14 + $0x50] ss:$8 sps:$4 sm:$0xff]  }
 0x536   :  { %966 = vmatpush1.bf16.msra.mxu1 %v1765_v6  ;;  %v1801_v6 = vld [vmem:[#allocation14 + $0x60] ss:$8 sps:$4 sm:$0xff]  }
 0x537   :  { %967 = vmatprep.subr.bf16.mxu1 %v1770_v36  ;;  %v1806_v36 = vld [vmem:[#allocation14 + $0x74] ss:$8 sps:$4 sm:$0xff]  }
 0x53a   :  { %968 = vmatpush1.bf16.msra.mxu1 %v1768_v37  ;;  %v1804_v37 = vld [vmem:[#allocation14 + $0x70] ss:$8 sps:$4 sm:$0xff]  }
 0x53b   :  { %969 = vmatprep.subr.bf16.mxu1 %v1773_v39  ;;  %v1809_v39 = vld [vmem:[#allocation14 + $0x84] ss:$8 sps:$4 sm:$0xff]  }
 0x53e   :  { %970 = vmatpush1.bf16.msra.mxu1 %v1771_v40  ;;  %v1807_v40 = vld [vmem:[#allocation14 + $0x80] ss:$8 sps:$4 sm:$0xff]  }
 0x53f   :  { %971 = vmatprep.subr.bf16.mxu1 %v1776_v41  ;;  %v1812_v41 = vld [vmem:[#allocation14 + $0x94] ss:$8 sps:$4 sm:$0xff]  }
 0x542   :  { %972 = vmatpush1.bf16.msra.mxu1 %v1774_v42  ;;  %v1810_v42 = vld [vmem:[#allocation14 + $0x90] ss:$8 sps:$4 sm:$0xff]  }
 0x543   :  { %973 = vmatprep.subr.bf16.mxu1 %v1779_v43  ;;  %v1815_v43 = vld [vmem:[#allocation14 + $0xa4] ss:$8 sps:$4 sm:$0xff]  }
 0x546   :  { %974 = vmatpush1.bf16.msra.mxu1 %v1777_v45  ;;  %v1818_v45 = vld [vmem:[#allocation14 + $0xb4] ss:$8 sps:$4 sm:$0xff]  }
 0x547   :  { %975 = vmatprep.subr.bf16.mxu1 %v1782_v46  ;;  %v1816_v46 = vld [vmem:[#allocation14 + $0xb0] ss:$8 sps:$4 sm:$0xff]  }
 0x54a   :  { %976 = vmatpush1.bf16.msra.mxu1 %v1780_v47  ;;  %v1821_v47 = vld [vmem:[#allocation14 + $0xc4] ss:$8 sps:$4 sm:$0xff]  }
 0x5fc   :  { %v761_v48 = vpop.f32.mrb[16].mxu1 }
 0x5fd   :  { %v765_v49 = vmul.f32 0.0625, %v761_v48  ;;  %v1698_v50 = vpop.f32.mrb[17].mxu1  ;;  %v1819_v48 = vld [vmem:[#allocation14 + $0xc0] ss:$8 sps:$4 sm:$0xff]  }
 0x5fe   :  { %v1822_v50 = vld [vmem:[#allocation14 + $0xd0] ss:$8 sps:$4 sm:$0xff]  }
 0x5ff   :  { %v840_v52 = vmul.f32 %v765_v49, %v765_v49 }
 0x600   :  { %v834_v51 = vpop.f32.mrb[18].mxu1 }
 0x601   :  { %v838_v53 = vmul.f32 0.0625, %v834_v51  ;;  %v1705_v54 = vpop.f32.mrb[19].mxu1  ;;  %v1827_v51 = vld [vmem:[#allocation14 + $0xe4] ss:$8 sps:$4 sm:$0xff]  }
 0x602   :  { %v1828_v54 = vld [vmem:[#allocation14 + $0xf0] ss:$8 sps:$4 sm:$0xff]  }
 0x603   :  { %v841_v55 = vsub.f32 %v838_v53, %v840_v52  ;;  %v1825_v52 = vld [vmem:[#allocation14 + $0xe0] ss:$8 sps:$4 sm:$0xff]   ;;  %v1830_v53 = vld [vmem:[#allocation14 + $0xf4] ss:$8 sps:$4 sm:$0xff]  }
 0x605   :  { %v842_v56 = vadd.f32 1e-05, %v841_v55 }
 0x607   :  { %1835 = vrsqrt.f32 %v842_v56 }
 0x611   :  { %v1836_v58 = vpop.eup %1835 }
 0x612   :  { %v844_v59 = vmul.f32 %v1836_v58, %v839_v57 }
 0x614   :  { %v845_v60 = vmul.f32 %v844_v59, %v765_v49  ;;  %v853_v61 = vrot.slane %v844_v59, %v2324_v30  ;;  %v1824_v49 = vld [vmem:[#allocation14 + $0xd4] ss:$8 sps:$4 sm:$0xff]  }
 0x616   :  { %v847_v62 = vrot.slane %v845_v60, 7  ;;  %v854_v63 = vmul.f32 %v853_v61, %v2362_v21  ;;  %v855_v1 = vmul.f32 %v853_v61, %v2364_v23  ;;  %v1785_v23 = vld [vmem:[#allocation14 + $0x4] ss:$8 sps:$4 sm:$0xff]  }
 0x618   :  { %v849_v2 = vsub.f32 %v839_v57, %v847_v62 }
 0x61a   :  { %v859_v3 = vrot.slane %v849_v2, %v2328_v38 }
 0x61c   :  { %v860_v4 = vadd.f32 %v859_v3, %v854_v63  ;;  %v861_v5 = vadd.f32 %v859_v3, %v855_v1 }
 0x61e   :  { %v862_v7 = vmax.f32 %v860_v4, 0.0  ;;  %v863_v8 = vmax.f32 %v861_v5, 0.0 }
 0x620   :  { %v864_v9 = vpack.c.bf16 %v863_v8, %v862_v7  ;;  %v2099_v7 = vmov 1983009808  }
 0x621   :  { %v1167_v8 = vunpack.c.l.s4 %v2099_v7 }
 0x622   :  { %994 = vmatmul.mubr.bf16.vlgmr.msra.gmra.mrb[20].mxu1 %v864_v9 }
 0x623   :  { %v1168_v9 = vunpack.c.0.s8 %v1167_v8 }
 0x6f5   :  { %v2383_v10 = vpop.f32.mrb[20].mxu1 }
 0x6f6   :  { %v2385_v11 = vpop.f32.mrb[21].mxu1  ;;  %v1077_v13 = vmul.f32 %v2383_v10, %v2383_v10 }
 0x6f7   :  { %v2387_v12 = vpop.f32.mrb[22].mxu1  ;;  %v1078_v18 = vmul.f32 %v2385_v11, %v2385_v11 }
 0x6f8   :  { %v1726_v14 = vpack.c.bf16 %v2387_v12, %v2383_v10  ;;  %v1079_v16 = vmul.f32 %v2387_v12, %v2387_v12  ;;  %v2395_v17 = vpop.f32.mrb[23].mxu1 }
 0x6f9   :  { %v1724_v19 = vpack.c.bf16 %v2395_v17, %v2385_v11  ;;  %v1080_v20 = vmul.f32 %v2395_v17, %v2395_v17 }
 0x6fa   :  { %v1730_v21 = vpack.c.bf16 %v1079_v16, %v1077_v13 }
 0x6fb   :  { %v1728_v22 = vpack.c.bf16 %v1080_v20, %v1078_v18  ;;  %1725 = vmatprep.subr.bf16.mxu0 %v1724_v19  ;;  %v1154_v19 = vld [vmem:[#allocation13] sm:$0xf] }
 0x6fc   :  { %1727 = vmatpush1.bf16.msra.mxu0 %v1726_v14  ;;  %v1171_v14 = vsub.s32 %v1168_v9, %v2318_v28 }
 0x6fd   :  { %1729 = vmatprep.subr.bf16.mxu0 %v1728_v22 }
 0x6ff   :  { %1572 = vmatmul.mubr.msk.f32.vlgmr.msra.gmra.mrb[4].mxu0 %vm213_vm3, %v2097_v15 }
 0x700   :  { %1731 = vmatpush1.bf16.msra.mxu0 %v1730_v21  ;;  %1145 = vmatprep.mubr.f32.mxu0 %v2094_v0  ;;  %v1795_v0 = vld [vmem:[#allocation14 + $0x40] ss:$8 sps:$4 sm:$0xff]   ;;  %v1182_v21 = vsub.s32 2, %v2318_v28 }
 0x701   :  { %1446 = vmatprep.subr.bf16.mxu0 %v1785_v23 }
 0x703   :  { %1573 = vmatmul.mubr.msk.f32.vlgmr.msra.gmra.mrb[6].mxu0 %vm213_vm3, %v2097_v15  ;;  %v1803_v15 = vld [vmem:[#allocation14 + $0x64] ss:$8 sps:$4 sm:$0xff]  }
 0x704   :  { %1447 = vmatpush1.bf16.msra.mxu0 %v1783_v24 }
 0x705   :  { %1448 = vmatprep.subr.bf16.mxu0 %v1788_v25 }
 0x708   :  { %1449 = vmatpush1.bf16.msra.mxu0 %v1786_v26 }
 0x709   :  { %1450 = vmatprep.subr.bf16.mxu0 %v1791_v27 }
 0x70c   :  { %1451 = vmatpush1.bf16.msra.mxu0 %v1789_v29 }
 0x70d   :  { %1452 = vmatprep.subr.bf16.mxu0 %v1794_v31 }
 0x710   :  { %1453 = vmatpush1.bf16.msra.mxu0 %v1792_v32 }
 0x711   :  { %1454 = vmatprep.subr.bf16.mxu0 %v1797_v33 }
 0x714   :  { %1455 = vmatpush1.bf16.msra.mxu0 %v1795_v0 }
 0x715   :  { %1456 = vmatprep.subr.bf16.mxu0 %v1800_v34 }
 0x718   :  { %1457 = vmatpush1.bf16.msra.mxu0 %v1798_v35 }
 0x719   :  { %1458 = vmatprep.subr.bf16.mxu0 %v1803_v15 }
 0x71c   :  { %1459 = vmatpush1.bf16.msra.mxu0 %v1801_v6  ;;  %v1220_v6 = vsub.s32 3, %v2318_v28  ;;  %v1274_v28 = vld [vmem:[#allocation16] sm:$0x3] }
 0x71d   :  { %1460 = vmatprep.subr.bf16.mxu0 %v1806_v36 }
 0x720   :  { %1461 = vmatpush1.bf16.msra.mxu0 %v1804_v37 }
 0x721   :  { %1462 = vmatprep.subr.bf16.mxu0 %v1809_v39 }
 0x724   :  { %1463 = vmatpush1.bf16.msra.mxu0 %v1807_v40 }
 0x725   :  { %1464 = vmatprep.subr.bf16.mxu0 %v1812_v41 }
 0x728   :  { %1465 = vmatpush1.bf16.msra.mxu0 %v1810_v42 }
 0x729   :  { %1466 = vmatprep.subr.bf16.mxu0 %v1815_v43 }
 0x72c   :  { %1467 = vmatpush1.bf16.msra.mxu0 %v1813_v44 }
 0x72d   :  { %1468 = vmatprep.subr.bf16.mxu0 %v1818_v45 }
 0x730   :  { %1469 = vmatpush1.bf16.msra.mxu0 %v1816_v46 }
 0x731   :  { %1470 = vmatprep.subr.bf16.mxu0 %v1821_v47 }
 0x734   :  { %1471 = vmatpush1.bf16.msra.mxu0 %v1819_v48  ;;  %v1279_v48 = vrot.slane %v1274_v28, %v2324_v30 }
 0x735   :  { %1472 = vmatprep.subr.bf16.mxu0 %v1824_v49  ;;  %v1283_v49 = vrot.slane %v1274_v28, %v2328_v38 }
 0x738   :  { %1473 = vmatpush1.bf16.msra.mxu0 %v1822_v50 }
 0x739   :  { %1474 = vmatprep.subr.bf16.mxu0 %v1827_v51 }
 0x73c   :  { %1475 = vmatpush1.bf16.msra.mxu0 %v1825_v52 }
 0x73d   :  { %1476 = vmatprep.subr.bf16.mxu0 %v1830_v53 }
 0x740   :  { %1477 = vmatpush1.bf16.msra.mxu0 %v1828_v54 }
 0x7d2   :  { %v1070_v55 = vpop.f32.mrb[4].mxu0 }
 0x7d3   :  { %v1075_v56 = vmul.f32 0.0625, %v1070_v55  ;;  %v1072_v57 = vpop.f32.mrb[5].mxu0 }
 0x7d4   :  { %v1076_v58 = vmul.f32 0.0625, %v1072_v57 }
 0x7d5   :  { %v1155_v60 = vmul.f32 %v1075_v56, %v1075_v56 }
 0x7d6   :  { %v1147_v59 = vpop.f32.mrb[6].mxu0  ;;  %v1156_v63 = vmul.f32 %v1076_v58, %v1076_v58 }
 0x7d7   :  { %v1152_v61 = vmul.f32 0.0625, %v1147_v59  ;;  %v1149_v62 = vpop.f32.mrb[7].mxu0 }
 0x7d8   :  { %v1153_v1 = vmul.f32 0.0625, %v1149_v62 }
 0x7d9   :  { %v1157_v2 = vsub.f32 %v1152_v61, %v1155_v60 }
 0x7da   :  { %v1158_v3 = vsub.f32 %v1153_v1, %v1156_v63 }
 0x7db   :  { %v1159_v4 = vadd.f32 1e-05, %v1157_v2 }
 0x7dc   :  { %v1160_v5 = vadd.f32 1e-05, %v1158_v3 }
 0x7dd   :  { %1837 = vrsqrt.f32 %v1159_v4 }
 0x7de   :  { %1839 = vrsqrt.f32 %v1160_v5 }
 0x7e7   :  { %v1838_v13 = vpop.eup %1837 }
 0x7e8   :  { %v1840_v16 = vpop.eup %1839 }
 0x7e9   :  { %v1165_v18 = vcombine.low %v1838_v13, %v1840_v16 }
 0x7eb   :  { %v1172_v20 = vrot.slane %v1165_v18, %v1171_v14 }
 0x7ed   :  { %v1174_v22 = vmul.f32 %v1172_v20, %v1154_v19 }
 0x7ef   :  { %v1179_v23 = vrot.slane %v1174_v22, %v2324_v30  ;;  %v1183_v24 = vrot.slane %v1174_v22, %v1182_v21 }
 0x7f1   :  { %v1186_v25 = vmul.f32 %v1179_v23, %v1075_v56  ;;  %v1187_v26 = vmul.f32 %v1183_v24, %v1076_v58  ;;  %v1208_v27 = vrot.slane %v1183_v24, %v2324_v30  ;;  %v1204_v29 = vrot.slane %v1179_v23, %v2324_v30 }
 0x7f3   :  { %v1190_v31 = vcombine.low %v1186_v25, %v1187_v26  ;;  %v1210_v32 = vmul.f32 %v1208_v27, %v2385_v11  ;;  %v1212_v33 = vmul.f32 %v1208_v27, %v2395_v17  ;;  %v1209_v0 = vmul.f32 %v1204_v29, %v2383_v10 }
 0x7f4   :  { %v1211_v34 = vmul.f32 %v1204_v29, %v2387_v12 }
 0x7f5   :  { %v1197_v35 = vrot.slane %v1190_v31, %v1171_v14 }
 0x7f7   :  { %v1198_v15 = vrot.slane %v1197_v35, 7 }
 0x7f9   :  { %v1200_v36 = vsub.f32 %v1154_v19, %v1198_v15 }
 0x7fb   :  { %v1221_v37 = vrot.slane %v1200_v36, %v1220_v6  ;;  %v1217_v39 = vrot.slane %v1200_v36, %v2328_v38 }
 0x7fd   :  { %v1231_v40 = vrot.slane %v1221_v37, %v2328_v38  ;;  %v1227_v41 = vrot.slane %v1217_v39, %v2328_v38 }
 0x7ff   :  { %v1233_v42 = vadd.f32 %v1231_v40, %v1210_v32  ;;  %v1235_v11 = vadd.f32 %v1231_v40, %v1212_v33  ;;  %v1232_v43 = vadd.f32 %v1227_v41, %v1209_v0  ;;  %v1234_v17 = vadd.f32 %v1227_v41, %v1211_v34 }
 0x801   :  { %v1237_v44 = vmax.f32 %v1233_v42, 0.0  ;;  %v1239_v10 = vmax.f32 %v1235_v11, 0.0  ;;  %v1236_v45 = vmax.f32 %v1232_v43, 0.0  ;;  %v1238_v12 = vmax.f32 %v1234_v17, 0.0 }
 0x803   :  { %v1241_v46 = vpack.c.bf16 %v1239_v10, %v1237_v44  ;;  %v1240_v47 = vpack.c.bf16 %v1238_v12, %v1236_v45 }
 0x805   :  { %1478 = vmatprep.mubr.bf16.mxu0 %v1241_v46 }
 0x806   :  { %1479 = vmatmul.mubr.bf16.vlgmr.msra.gmra.mrb[8].mxu0 %v1240_v47 }
 0x8d9   :  { %v1480_v50 = vpop.f32.mrb[8].mxu0 }
 0x8da   :  { %v1481_v51 = vadd.f32 %v1480_v50, %v1279_v48  ;;  %v1482_v52 = vpop.f32.mrb[9].mxu0 }
 0x8db   :  { %v1483_v53 = vadd.f32 %v1482_v52, %v1283_v49  ;;  %v1484_v54 = vpop.f32.mrb[10].mxu0 }
 0x8dc   :  { %v1489_v55 = vmul.f32 0.5, %v1481_v51  ;;  %v1485_v56 = vadd.f32 %v1484_v54, %v1279_v48  ;;  %v1486_v57 = vpop.f32.mrb[11].mxu0 }
 0x8dd   :  { %v1490_v58 = vmul.f32 0.5, %v1483_v53  ;;  %v1487_v59 = vadd.f32 %v1486_v57, %v1283_v49 }
 0x8de   :  { %1841 = vtanh.f32 %v1489_v55  ;;  %v1491_v60 = vmul.f32 0.5, %v1485_v56 }
 0x8df   :  { %1843 = vtanh.f32 %v1490_v58  ;;  %v1492_v61 = vmul.f32 0.5, %v1487_v59 }
 0x8e0   :  { %1845 = vtanh.f32 %v1491_v60 }
 0x8e1   :  { %1847 = vtanh.f32 %v1492_v61 }
 0x8e8   :  { %v1842_v62 = vpop.eup %1841 }
 0x8e9   :  { %v1844_v30 = vpop.eup %1843  ;;  %v1497_v63 = vmul.f32 0.5, %v1842_v62 }
 0x8ea   :  { %v1846_v38 = vpop.eup %1845  ;;  %v1498_v1 = vmul.f32 0.5, %v1844_v30 }
 0x8eb   :  { %v1848_v2 = vpop.eup %1847  ;;  %v1501_v3 = vadd.f32 0.5, %v1497_v63  ;;  %v1499_v4 = vmul.f32 0.5, %v1846_v38 }
 0x8ec   :  { %v1502_v5 = vadd.f32 0.5, %v1498_v1  ;;  %v1500_v7 = vmul.f32 0.5, %v1848_v2 }
 0x8ed   :  { %v1503_v8 = vadd.f32 0.5, %v1499_v4 }
 0x8ee   :  { %v1504_v9 = vadd.f32 0.5, %v1500_v7  ;;  %v1608_v13 = vpack.c.bf16 %v1502_v5, %v1501_v3 }
 0x8f0   :  { %v1609_v14 = vpack.c.bf16 %v1504_v9, %v1503_v8  ;;  %1517 = vst [vmem:[#allocation17] sm:$0xff] %v1608_v13 }
 0x8f2   :  { %1518 = vst [vmem:[#allocation17 + $0x8] sm:$0xff] %v1609_v14 }
 0x8f3   :  { %2058 = shalt.err (!%p2055_p6)
}
 0x8f4   :  { %s2059_s15 = scalar_lea.hbm %s2449_s11, 256 }
 0x8f5   :  { %p2060_p7 = scmp.ne.s32.totalorder %s2449_s11, %s2059_s15  ;;  %p2063_p8 = scmp.lt.u32.totalorder %s2059_s15, %s2449_s11 }
 0x8f7   :  { %p2065_p9 = pnand %p2063_p8, %p2060_p7 }
 0x8f9   :  { %2068 = shalt.err (!%p2065_p9)
}
 0x8fa   :  { %1530 = dma.vmem_to_hbm [thread:$0]  %s1525_s16, 256, %s2449_s11, [#allocation4], %s2087_s13, %s2087_s13, %s2088_s19  }
 0x8fb   :  { %2079 = dma.done.wait [#allocation4], 256  }
 0x8fc   :  { %2080 = vsyncadd [#allocation4], 4294967040 }
 0x8fd   :  { %1534 = vsyncpa [#allocation3], 1 }
 0x8fe   :  { %1535 = vsyncpa [#allocation6], 1 }
 0x8ff   :  { %1536 = vsyncpa [#allocation9], 1 }
 0x900   :  { %1537 = vsyncpa [#allocation12], 1 }
 0x901   :  { %1538 = vsyncpa [#allocation15], 1 }
 0x902   :  { %1539 = vsyncpa [#allocation4], 1 }

</bundles_post_ra>
